<compile_context>
chip_gen: v7x
topology: tpu7x:2x2x1
jax: 0.10.0
libtpu: 0.0.40
codegen_flags: <defaults>
</compile_context>

<pallas_src>
import functools

import jax
import jax.numpy as jnp
import numpy as np
from jax.experimental import pallas as pl
from jax.experimental.pallas import tpu as pltpu


def _round_up(x, m):
    return ((x + m - 1) // m) * m


def _rnn_kernel(obs_ref, w1_ref, b1_ref, wg_ref, bg_ref, bnh_ref,
                w2_ref, b2_ref, out_ref):
    H = bnh_ref.shape[-1]

    # fc1 + ReLU (bf16 operands on the MXU, f32 accumulation).
    x = jnp.dot(obs_ref[...], w1_ref[...], preferred_element_type=jnp.float32)
    x = jnp.maximum(x + b1_ref[...], 0.0)
    xb = x.astype(jnp.bfloat16)

    # Fused GRU gate pre-activations, lane layout [ r | z | n_i | zero-pad ].
    # (W_hh @ 0 == 0; b_hh of the r/z gates is already folded into bg.)
    g = jnp.dot(xb, wg_ref[...], preferred_element_type=jnp.float32) + bg_ref[...]

    # sigmoid over the whole lane-dense slab: one EUP exp + one approx recip.
    s = pl.reciprocal(1.0 + jnp.exp(-g), approx=True)

    r = s[:, 0:H]
    z = s[:, H:2 * H]
    # n-gate: tanh(W_in x + b_in + r * b_hn)      (f32 gate math throughout)
    n = jnp.tanh(g[:, 2 * H:3 * H] + r * bnh_ref[...])

    # GRUCell with h0 == 0:  h' = (1 - z) * n  (+ z * h0 == 0).
    h_new = (1.0 - z) * n                                       # exact f32

    # fc2 on the bf16 MXU; q lands in lanes [0, A) of the padded q slab.
    q = jnp.dot(h_new.astype(jnp.bfloat16), w2_ref[...],
                preferred_element_type=jnp.float32) + b2_ref[...]

    # Output slab: lanes [0, H) = exact f32 h', lanes [H, H+A) = q, rest 0.
    out_ref[:, 0:H] = h_new.astype(out_ref.dtype)
    out_ref[:, H:] = q.astype(out_ref.dtype)


def prepare_params(params, *, hidden_dim, n_actions):
    """One-time repacking of the PyTorch-style parameters into the kernel's
    lane-padded bf16/f32 layout.  Call once at init, not per forward."""
    H, A = hidden_dim, n_actions

    w1 = params["w1"].astype(jnp.bfloat16)                       # (I, H)
    b1 = params["b1"].reshape(1, H).astype(jnp.float32)

    gate_lanes = _round_up(3 * H, 128)
    w_g = jnp.zeros((H, gate_lanes), jnp.bfloat16)
    w_g = w_g.at[:, :3 * H].set(params["w_ih"].astype(jnp.bfloat16))

    b_ih = params["b_ih"].reshape(1, 3 * H).astype(jnp.float32)
    b_hh = params["b_hh"].reshape(1, 3 * H).astype(jnp.float32)
    b_g = jnp.zeros((1, gate_lanes), jnp.float32)
    # fold b_hh of the r/z gates (W_hh @ 0 == 0); keep the n-gate b_hh apart
    # because the GRU scales it by r.
    b_g = b_g.at[:, 0:2 * H].set(b_ih[:, 0:2 * H] + b_hh[:, 0:2 * H])
    b_g = b_g.at[:, 2 * H:3 * H].set(b_ih[:, 2 * H:3 * H])
    b_nh = b_hh[:, 2 * H:3 * H]                                  # (1, H)

    out_lanes = _round_up(H + A, 128)
    qw = out_lanes - H
    w2p = jnp.zeros((H, qw), jnp.bfloat16)
    w2p = w2p.at[:, :A].set(params["w2"].astype(jnp.bfloat16))
    b2p = jnp.zeros((1, qw), jnp.float32)
    b2p = b2p.at[:, :A].set(params["b2"].reshape(1, A).astype(jnp.float32))

    return {"w1": w1, "b1": b1, "w_g": w_g, "b_g": b_g, "b_nh": b_nh,
            "w2p": w2p, "b2p": b2p}


def rnn_forward(obs, hidden_state, prepped, *, hidden_dim, n_actions,
                tile_rows=2048):
    """obs: (..., I); hidden_state: (..., H) (accepted for API parity but
    ignored -- see semantics note).  Returns (q, h) with rows = prod(leading
    dims of obs).  q/h carry bf16-matmul-level error vs an f32 reference; h is
    not additionally rounded (stored as exact f32)."""
    del hidden_state  # never affects outputs in the reference module; not DMA'd
    H, A = hidden_dim, n_actions
    I = obs.shape[-1]

    obs2 = obs.reshape(-1, I).astype(jnp.bfloat16)
    B = obs2.shape[0]

    # Row tiling: multiples of 16 keep both f32 and packed-bf16 sublane tiling
    # happy; split into >= 2 blocks when possible so both v7x TCs get work.
    tile_rows = max(16, _round_up(tile_rows, 16))
    B16 = _round_up(B, 16)
    TB = min(tile_rows, B16)
    if TB == B16 and TB >= 32:
        TB = _round_up(TB // 2, 16)
    B_pad = _round_up(B16, TB)
    n_blocks = B_pad // TB
    if B_pad != B:
        obs2 = jnp.pad(obs2, ((0, B_pad - B), (0, 0)))

    out_lanes = H + prepped["w2p"].shape[1]
    consts = (prepped["w1"], prepped["b1"], prepped["w_g"], prepped["b_g"],
              prepped["b_nh"], prepped["w2p"], prepped["b2p"])

    def _const_spec(arr):  # weights/biases stay VMEM-resident across grid steps
        return pl.BlockSpec(arr.shape, lambda i: (0, 0))

    slab = pl.pallas_call(
        _rnn_kernel,
        out_shape=jax.ShapeDtypeStruct((B_pad, out_lanes), jnp.float32),
        grid_spec=pltpu.PrefetchScalarGridSpec(
            num_scalar_prefetch=0,
            grid=(n_blocks,),
            in_specs=[pl.BlockSpec((TB, I), lambda i: (i, 0))]
                     + [_const_spec(c) for c in consts],
            out_specs=pl.BlockSpec((TB, out_lanes), lambda i: (i, 0)),
        ),
        compiler_params=pltpu.CompilerParams(
            dimension_semantics=("parallel",),
        ),
    )(obs2, *consts)

    # Rows [B, B_pad) are padding garbage; slice them (and the zero lanes) off.
    h = slab[:B, :H]
    q = slab[:B, H:H + A]
    return q, h


def init_params(key, input_shape, hidden_dim, n_actions):
    """Deterministic init mimicking PyTorch's uniform(-1/sqrt(fan_in), 1/sqrt(fan_in)).

    Weights stored pre-transposed as (in_features, out_features); GRU gate order
    along the 3H axis is [r | z | n] (same as PyTorch)."""
    ks = jax.random.split(key, 10)

    def u(k, shape, fan_in):
        bound = 1.0 / jnp.sqrt(jnp.float32(fan_in))
        return jax.random.uniform(k, shape, jnp.float32, -bound, bound)

    H = hidden_dim
    return {
        "w1": u(ks[0], (input_shape, H), input_shape),
        "b1": u(ks[1], (1, H), input_shape),
        "w_ih": u(ks[2], (H, 3 * H), H),
        "b_ih": u(ks[3], (1, 3 * H), H),
        "w_hh": u(ks[4], (H, 3 * H), H),   # kept for API parity; unused (h0 == 0)
        "b_hh": u(ks[5], (1, 3 * H), H),
        "w2": u(ks[6], (H, n_actions), H),
        "b2": u(ks[7], (1, n_actions), H),
    }


def _reference_forward(obs, params, hidden_dim, n_actions):
    """Pure-JAX f32 emulation of the PyTorch module (GRUCell hidden == 0)."""
    H = hidden_dim
    x = obs.reshape(-1, obs.shape[-1]) @ params["w1"] + params["b1"]
    x = jnp.maximum(x, 0.0)
    gi = x @ params["w_ih"] + params["b_ih"]
    gh = params["b_hh"]                       # W_hh @ 0 == 0
    r = jax.nn.sigmoid(gi[:, :H] + gh[:, :H])
    z = jax.nn.sigmoid(gi[:, H:2 * H] + gh[:, H:2 * H])
    n = jnp.tanh(gi[:, 2 * H:] + r * gh[:, 2 * H:])
    h = (1.0 - z) * n
    q = h @ params["w2"] + params["b2"]
    return q, h


if __name__ == "__main__":
    INPUT_SHAPE = 16     # obs feature dim
    HIDDEN_DIM = 32      # args.rnn_hidden_dim
    N_ACTIONS = 8        # args.n_actions
    BATCH, N_AGENTS = 2, 4

    key = jax.random.PRNGKey(0)
    k_obs, k_hid, k_par = jax.random.split(key, 3)

    obs = jax.random.normal(k_obs, (BATCH, N_AGENTS, INPUT_SHAPE), jnp.float32)
    hidden_state = jax.random.normal(k_hid, (BATCH, N_AGENTS, HIDDEN_DIM), jnp.float32)
    params = init_params(k_par, INPUT_SHAPE, HIDDEN_DIM, N_ACTIONS)

    # one-time repack, then a jitted fused forward
    prepped = prepare_params(params, hidden_dim=HIDDEN_DIM, n_actions=N_ACTIONS)
    fwd = jax.jit(functools.partial(rnn_forward, hidden_dim=HIDDEN_DIM,
                                    n_actions=N_ACTIONS))

    q, h = fwd(obs, hidden_state, prepped)
    jax.block_until_ready((q, h))

    assert q.shape == (BATCH * N_AGENTS, N_ACTIONS)
    assert h.shape == (BATCH * N_AGENTS, HIDDEN_DIM)
    assert q.dtype == jnp.float32 and h.dtype == jnp.float32

    # Tolerance covers bf16 matmul operands + approx-reciprocal sigmoid; a
    # layout/alignment bug would produce O(1) errors and fail this check.
    q_ref, h_ref = _reference_forward(obs, params, HIDDEN_DIM, N_ACTIONS)
    np.testing.assert_allclose(np.asarray(q), np.asarray(q_ref), rtol=5e-2, atol=5e-2)
    np.testing.assert_allclose(np.asarray(h), np.asarray(h_ref), rtol=5e-2, atol=5e-2)

    print("KERNEL_OK")
</pallas_src>

<mosaic_0001>
module attributes {stable_mosaic.version = 11 : i64} {
  func.func @_rnn_kernel(%arg0: i32, %arg1: memref<16x16xbf16, #tpu.memory_space<vmem>>, %arg2: memref<16x32xbf16, #tpu.memory_space<vmem>>, %arg3: memref<1x32xf32, #tpu.memory_space<vmem>>, %arg4: memref<32x128xbf16, #tpu.memory_space<vmem>>, %arg5: memref<1x128xf32, #tpu.memory_space<vmem>>, %arg6: memref<1x32xf32, #tpu.memory_space<vmem>>, %arg7: memref<32x96xbf16, #tpu.memory_space<vmem>>, %arg8: memref<1x96xf32, #tpu.memory_space<vmem>>, %arg9: memref<16x128xf32, #tpu.memory_space<vmem>>) attributes {dimension_semantics = [#tpu.dimension_semantics<parallel>], iteration_bounds = array<i64: 1>, scalar_prefetch = 0 : i64, scratch_operands = 0 : i64, tpu.core_type = #tpu.core_type<tc>, window_params = [{transform_indices = @transform_0, window_bounds = array<i64: 16, 16>}, {pipeline_mode = #tpu.pipeline_mode<synchronous>, transform_indices = @transform_1, window_bounds = array<i64: 16, 32>}, {pipeline_mode = #tpu.pipeline_mode<synchronous>, transform_indices = @transform_2, window_bounds = array<i64: 1, 32>}, {pipeline_mode = #tpu.pipeline_mode<synchronous>, transform_indices = @transform_3, window_bounds = array<i64: 32, 128>}, {pipeline_mode = #tpu.pipeline_mode<synchronous>, transform_indices = @transform_4, window_bounds = array<i64: 1, 128>}, {pipeline_mode = #tpu.pipeline_mode<synchronous>, transform_indices = @transform_5, window_bounds = array<i64: 1, 32>}, {pipeline_mode = #tpu.pipeline_mode<synchronous>, transform_indices = @transform_6, window_bounds = array<i64: 32, 96>}, {pipeline_mode = #tpu.pipeline_mode<synchronous>, transform_indices = @transform_7, window_bounds = array<i64: 1, 96>}, {transform_indices = @transform_8, window_bounds = array<i64: 16, 128>}]} {
    %c0 = arith.constant 0 : index
    %c0_0 = arith.constant 0 : index
    %0 = vector.load %arg1[%c0, %c0_0] : memref<16x16xbf16, #tpu.memory_space<vmem>>, vector<16x16xbf16>
    %c0_1 = arith.constant 0 : index
    %c0_2 = arith.constant 0 : index
    %1 = vector.load %arg2[%c0_1, %c0_2] : memref<16x32xbf16, #tpu.memory_space<vmem>>, vector<16x32xbf16>
    %cst = arith.constant dense<0.000000e+00> : vector<16x32xf32>
    %2 = tpu.matmul %0, %1, %cst {dimension_numbers = #tpu.dot_dimension_numbers<[1], [0], [0], [1], [0, 0, 1, 1], [], []>} : vector<16x16xbf16>, vector<16x32xbf16>, vector<16x32xf32> -> vector<16x32xf32>
    %c0_3 = arith.constant 0 : index
    %c0_4 = arith.constant 0 : index
    %3 = vector.load %arg3[%c0_3, %c0_4] : memref<1x32xf32, #tpu.memory_space<vmem>>, vector<1x32xf32>
    %4 = vector.broadcast %3 : vector<1x32xf32> to vector<16x32xf32>
    %5 = arith.addf %2, %4 : vector<16x32xf32>
    %cst_5 = arith.constant 0.000000e+00 : f32
    %6 = vector.broadcast %cst_5 : f32 to vector<16x32xf32>
    %7 = arith.maximumf %5, %6 : vector<16x32xf32>
    %8 = arith.truncf %7 : vector<16x32xf32> to vector<16x32xbf16>
    %c0_6 = arith.constant 0 : index
    %c0_7 = arith.constant 0 : index
    %9 = vector.load %arg4[%c0_6, %c0_7] : memref<32x128xbf16, #tpu.memory_space<vmem>>, vector<32x128xbf16>
    %cst_8 = arith.constant dense<0.000000e+00> : vector<16x128xf32>
    %10 = tpu.matmul %8, %9, %cst_8 {dimension_numbers = #tpu.dot_dimension_numbers<[1], [0], [0], [1], [0, 0, 1, 1], [], []>} : vector<16x32xbf16>, vector<32x128xbf16>, vector<16x128xf32> -> vector<16x128xf32>
    %c0_9 = arith.constant 0 : index
    %c0_10 = arith.constant 0 : index
    %11 = vector.load %arg5[%c0_9, %c0_10] : memref<1x128xf32, #tpu.memory_space<vmem>>, vector<1x128xf32>
    %12 = vector.broadcast %11 : vector<1x128xf32> to vector<16x128xf32>
    %13 = arith.addf %10, %12 : vector<16x128xf32>
    %cst_11 = arith.constant 0.000000e+00 : f32
    %14 = vector.broadcast %cst_11 : f32 to vector<16x128xf32>
    %15 = arith.subf %14, %13 : vector<16x128xf32>
    %16 = math.exp %15 : vector<16x128xf32>
    %cst_12 = arith.constant 1.000000e+00 : f32
    %17 = vector.broadcast %cst_12 : f32 to vector<16x128xf32>
    %18 = arith.addf %17, %16 : vector<16x128xf32>
    %19 = tpu.reciprocal %18 {approx = true} : vector<16x128xf32> -> vector<16x128xf32>
    %20 = vector.extract_strided_slice %19 {offsets = [0, 0], sizes = [16, 32], strides = [1, 1]} : vector<16x128xf32> to vector<16x32xf32>
    %21 = vector.extract_strided_slice %19 {offsets = [0, 32], sizes = [16, 32], strides = [1, 1]} : vector<16x128xf32> to vector<16x32xf32>
    %22 = vector.extract_strided_slice %13 {offsets = [0, 64], sizes = [16, 32], strides = [1, 1]} : vector<16x128xf32> to vector<16x32xf32>
    %c0_13 = arith.constant 0 : index
    %c0_14 = arith.constant 0 : index
    %23 = vector.load %arg6[%c0_13, %c0_14] : memref<1x32xf32, #tpu.memory_space<vmem>>, vector<1x32xf32>
    %24 = vector.broadcast %23 : vector<1x32xf32> to vector<16x32xf32>
    %25 = arith.mulf %20, %24 : vector<16x32xf32>
    %26 = arith.addf %22, %25 : vector<16x32xf32>
    %27 = math.tanh %26 : vector<16x32xf32>
    %cst_15 = arith.constant 1.000000e+00 : f32
    %28 = vector.broadcast %cst_15 : f32 to vector<16x32xf32>
    %29 = arith.subf %28, %21 : vector<16x32xf32>
    %30 = arith.mulf %29, %27 : vector<16x32xf32>
    %31 = arith.truncf %30 : vector<16x32xf32> to vector<16x32xbf16>
    %c0_16 = arith.constant 0 : index
    %c0_17 = arith.constant 0 : index
    %32 = vector.load %arg7[%c0_16, %c0_17] : memref<32x96xbf16, #tpu.memory_space<vmem>>, vector<32x96xbf16>
    %cst_18 = arith.constant dense<0.000000e+00> : vector<16x96xf32>
    %33 = tpu.matmul %31, %32, %cst_18 {dimension_numbers = #tpu.dot_dimension_numbers<[1], [0], [0], [1], [0, 0, 1, 1], [], []>} : vector<16x32xbf16>, vector<32x96xbf16>, vector<16x96xf32> -> vector<16x96xf32>
    %c0_19 = arith.constant 0 : index
    %c0_20 = arith.constant 0 : index
    %34 = vector.load %arg8[%c0_19, %c0_20] : memref<1x96xf32, #tpu.memory_space<vmem>>, vector<1x96xf32>
    %35 = vector.broadcast %34 : vector<1x96xf32> to vector<16x96xf32>
    %36 = arith.addf %33, %35 : vector<16x96xf32>
    %c0_21 = arith.constant 0 : index
    %c0_22 = arith.constant 0 : index
    %37 = vector.load %arg9[%c0_21, %c0_22] : memref<16x128xf32, #tpu.memory_space<vmem>>, vector<16x32xf32>
    tpu.vector_store %arg9[%c0_21, %c0_22], %30 {strides = array<i32>} : memref<16x128xf32, #tpu.memory_space<vmem>>, vector<16x32xf32>,
    %c0_23 = arith.constant 0 : index
    %c32 = arith.constant 32 : index
    %38 = vector.load %arg9[%c0_23, %c32] : memref<16x128xf32, #tpu.memory_space<vmem>>, vector<16x96xf32>
    tpu.vector_store %arg9[%c0_23, %c32], %36 {strides = array<i32>} : memref<16x128xf32, #tpu.memory_space<vmem>>, vector<16x96xf32>,
    return
  }
  func.func @transform_0(%arg0: i32) -> (i32, i32) {
    %c0_i32 = arith.constant 0 : i32
    %c0_i32_0 = arith.constant 0 : i32
    return %arg0, %c0_i32 : i32, i32
  }
  func.func @transform_1(%arg0: i32) -> (i32, i32) {
    %c0_i32 = arith.constant 0 : i32
    %c0_i32_0 = arith.constant 0 : i32
    %c0_i32_1 = arith.constant 0 : i32
    return %c0_i32, %c0_i32_0 : i32, i32
  }
  func.func @transform_2(%arg0: i32) -> (i32, i32) {
    %c0_i32 = arith.constant 0 : i32
    %c0_i32_0 = arith.constant 0 : i32
    %c0_i32_1 = arith.constant 0 : i32
    return %c0_i32, %c0_i32_0 : i32, i32
  }
  func.func @transform_3(%arg0: i32) -> (i32, i32) {
    %c0_i32 = arith.constant 0 : i32
    %c0_i32_0 = arith.constant 0 : i32
    %c0_i32_1 = arith.constant 0 : i32
    return %c0_i32, %c0_i32_0 : i32, i32
  }
  func.func @transform_4(%arg0: i32) -> (i32, i32) {
    %c0_i32 = arith.constant 0 : i32
    %c0_i32_0 = arith.constant 0 : i32
    %c0_i32_1 = arith.constant 0 : i32
    return %c0_i32, %c0_i32_0 : i32, i32
  }
  func.func @transform_5(%arg0: i32) -> (i32, i32) {
    %c0_i32 = arith.constant 0 : i32
    %c0_i32_0 = arith.constant 0 : i32
    %c0_i32_1 = arith.constant 0 : i32
    return %c0_i32, %c0_i32_0 : i32, i32
  }
  func.func @transform_6(%arg0: i32) -> (i32, i32) {
    %c0_i32 = arith.constant 0 : i32
    %c0_i32_0 = arith.constant 0 : i32
    %c0_i32_1 = arith.constant 0 : i32
    return %c0_i32, %c0_i32_0 : i32, i32
  }
  func.func @transform_7(%arg0: i32) -> (i32, i32) {
    %c0_i32 = arith.constant 0 : i32
    %c0_i32_0 = arith.constant 0 : i32
    %c0_i32_1 = arith.constant 0 : i32
    return %c0_i32, %c0_i32_0 : i32, i32
  }
  func.func @transform_8(%arg0: i32) -> (i32, i32) {
    %c0_i32 = arith.constant 0 : i32
    %c0_i32_0 = arith.constant 0 : i32
    return %arg0, %c0_i32 : i32, i32
  }
}

</mosaic_0001>

<bundles_post_ra>
// kernel: rnn_forward.1
= control target key start
LH: loop header
LB: loop body
LE: loop exit
PB: predicated region body
PF: predicated region fallthrough
CT: control target
= control target key end

     0   :  { %13 = vsyncpa [#allocation3], 0  ;;  %s617_s0 = inlined_call_operand.vmem [shape: bf16[16,16], index: 0, kind: input, shape index: {}]   ;;  %s618_s1 = inlined_call_operand.vmem [shape: bf16[16,32], index: 1, kind: input, shape index: {}]   ;;  %s619_s2 = inlined_call_operand.hbm [shape: f32[1,32], index: 2, kind: input, shape index: {}]   ;;  %s620_s3 = inlined_call_operand.vmem [shape: bf16[32,128], index: 3, kind: input, shape index: {}]   ;;  %s621_s4 = inlined_call_operand.hbm [shape: f32[1,128], index: 4, kind: input, shape index: {}]   ;;  %s622_s5 = inlined_call_operand.vmem [shape: f32[1,32], index: 5, kind: input, shape index: {}]   ;;  %s623_s6 = inlined_call_operand.vmem [shape: bf16[32,96], index: 6, kind: input, shape index: {}]   ;;  %s624_s7 = inlined_call_operand.hbm [shape: f32[1,96], index: 7, kind: input, shape index: {}]   ;;  %s625_s8 = inlined_call_operand.vmem [shape: f32[16,128], index: 8, kind: output, shape index: {}]  }
   0x1   :  { %14 = vsyncpa [#allocation5], 0  ;;  %s483_s27 = smov [#allocation4]   ;;  %s484_s29 = smov [#allocation2]  }
   0x2   :  { %s37_s28 = sshll.u32 %s483_s27, 4  ;;  %s25_s30 = sshll.u32 %s484_s29, 4  ;;  %s38_s28 = int_to_ptr.vmem [resolvable:$true] %s37_s28  ;;  %s26_s30 = int_to_ptr.vmem [resolvable:$true] %s25_s30 }
   0x3   :  { %s413_s11 = scalar_lea.hbm %s621_s4, 16 }
   0x4   :  { %p414_p0 = scmp.ne.s32.totalorder %s621_s4, %s413_s11  ;;  %p417_p1 = scmp.lt.u32.totalorder %s413_s11, %s621_s4 }
   0x6   :  { %p419_p2 = pnand %p417_p1, %p414_p0 }
   0x8   :  { %422 = shalt.err (!%p419_p2)
}
   0x9   :  { %s423_s16 = scalar_lea.vmem %s38_s28, 16  ;;  %s427_s17 = scalar_lea.vmem %s38_s28, 32 }
   0xa   :  { %p424_p3 = scmp.ne.s32.totalorder %s38_s28, %s423_s16  ;;  %p428_p4 = scmp.lt.s32.totalorder %s38_s28, %s38_s28 }
   0xb   :  { %p429_p5 = scmp.lt.s32.totalorder %s427_s17, %s423_s16 }
   0xd   :  { %p430_p6 = por %p429_p5, %p428_p4 }
   0xf   :  { %p431_p7 = pnand %p430_p6, %p424_p3 }
  0x11   :  { %434 = shalt.err (!%p431_p7)
}
  0x12   :  { %40 = dma.hbm_to_vmem [thread:$0]  %s621_s4, 16, %s38_s28, [#allocation5]  }
  0x13   :  { %s435_s22 = scalar_lea.hbm %s619_s2, 16 }
  0x14   :  { %p436_p8 = scmp.ne.s32.totalorder %s619_s2, %s435_s22  ;;  %p439_p9 = scmp.lt.u32.totalorder %s435_s22, %s619_s2 }
  0x16   :  { %p441_p10 = pnand %p439_p9, %p436_p8 }
  0x18   :  { %444 = shalt.err (!%p441_p10)
}
  0x19   :  { %s445_s27 = scalar_lea.vmem %s26_s30, 16  ;;  %s449_s29 = scalar_lea.vmem %s26_s30, 32 }
  0x1a   :  { %p446_p11 = scmp.ne.s32.totalorder %s26_s30, %s445_s27  ;;  %p450_p12 = scmp.lt.s32.totalorder %s26_s30, %s26_s30 }
  0x1b   :  { %p451_p13 = scmp.lt.s32.totalorder %s449_s29, %s445_s27 }
  0x1d   :  { %p452_p0 = por %p451_p13, %p450_p12 }
  0x1f   :  { %p453_p1 = pnand %p452_p0, %p446_p11 }
  0x21   :  { %456 = shalt.err (!%p453_p1)
}
  0x22   :  { %28 = dma.hbm_to_vmem [thread:$0]  %s619_s2, 16, %s26_s30, [#allocation3]  }
  0x23   :  { %s485_s9 = smov [#allocation6]   ;;  %s457_s13 = scalar_lea.hbm %s624_s7, 16 }
  0x24   :  { %s51_s10 = sshll.u32 %s485_s9, 4  ;;  %p458_p2 = scmp.ne.s32.totalorder %s624_s7, %s457_s13  ;;  %s52_s10 = int_to_ptr.vmem [resolvable:$true] %s51_s10 }
  0x25   :  { %p461_p3 = scmp.lt.u32.totalorder %s457_s13, %s624_s7 }
  0x27   :  { %p463_p4 = pnand %p461_p3, %p458_p2 }
  0x29   :  { %466 = shalt.err (!%p463_p4)
}
  0x2a   :  { %s467_s18 = scalar_lea.vmem %s52_s10, 16  ;;  %s471_s2 = scalar_lea.vmem %s52_s10, 32 }
  0x2b   :  { %p468_p5 = scmp.ne.s32.totalorder %s52_s10, %s467_s18  ;;  %p472_p6 = scmp.lt.s32.totalorder %s52_s10, %s52_s10 }
  0x2c   :  { %p473_p7 = scmp.lt.s32.totalorder %s471_s2, %s467_s18 }
  0x2e   :  { %p474_p8 = por %p473_p7, %p472_p6 }
  0x30   :  { %p475_p9 = pnand %p474_p8, %p468_p5 }
  0x32   :  { %478 = shalt.err (!%p475_p9)
}
  0x33   :  { %54 = dma.hbm_to_vmem [thread:$0]  %s624_s7, 16, %s52_s10, [#allocation5]  }
  0x34   :  { %479 = dma.done.wait [#allocation3], 16  }
  0x35   :  { %480 = vsyncadd [#allocation3], 4294967280 }
  0x36   :  { %481 = dma.done.wait [#allocation5], 32  }
  0x37   :  { %482 = vsyncadd [#allocation5], 4294967264  ;;  %v486_v0 = vmov 0.0   ;;  %vm487_vm0 = vmmov 0   ;;  %v395_v1 = vld [vmem:[%s618_s1] sm:$0xff]   ;;  %vm87_vm1 = vcmask 130048  }
  0x38   :  { %365 = vmatprep.subr.bf16.mxu0 %v486_v0  ;;  %367 = vmatprep.mubr.msk.bf16.mxu0 %vm487_vm0, %v486_v0  ;;  %v396_v2 = vld [vmem:[%s617_s0] sm:$0xff]   ;;  %v398_v4 = vld [vmem:[%s620_s3 + $0x8] sm:$0xff]   ;;  %vm158_vm2 = vcmask 261120   ;;  %s488_s26 = smov 64   ;;  %s489_s4 = smov 96   ;;  %vm335_vm3 = vcmask 1047808  }
  0x39   :  { %371 = vmatprep.subr.bf16.mxu1 %v486_v0  ;;  %375 = vmatprep.mubr.msk.bf16.mxu1 %vm487_vm0, %v486_v0  ;;  %v397_v3 = vld [vmem:[%s620_s3] sm:$0xff]   ;;  %v344_v5 = vld [vmem:[#allocation2] ss:$0 sm:$0xff]  ;;  %v348_v15 = vld [vmem:[#allocation4] ss:$0 sm:$0xff]  ;;  %s490_s12 = smov 32  }
  0x3a   :  { %366 = vmatpush3.bf16.msra.mxu0 %v395_v1  ;;  %372 = vmatpush3.bf16.msra.mxu1 %v397_v3  ;;  %v352_v30 = vld [vmem:[%s622_s5] ss:$0 sm:$0xff]  ;;  %v400_v42 = vld [vmem:[%s623_s6 + $0x8] sm:$0xff]  }
  0x3b   :  { %379 = vmatprep.subr.bf16.mxu0 %v486_v0  ;;  %373 = vmatprep.subr.bf16.mxu1 %v486_v0  ;;  %v399_v40 = vld [vmem:[%s623_s6] sm:$0xff]   ;;  %v353_v53 = vld [vmem:[#allocation6] ss:$0 sm:$0xff] }
  0x3d   :  { %368 = vmatmul.mubr.msk.bf16.vlgmr.msra.gmra.mrb[0].mxu0 %vm87_vm1, %v396_v2 }
  0x3e   :  { %383 = vmatprep.mubr.msk.bf16.mxu0 %vm487_vm0, %v486_v0  ;;  %374 = vmatpush3.bf16.msra.mxu1 %v398_v4 }
  0x3f   :  { %380 = vmatpush3.bf16.msra.mxu0 %v399_v40 }
  0x40   :  { %381 = vmatprep.subr.bf16.mxu0 %v486_v0 }
  0x43   :  { %382 = vmatpush3.bf16.msra.mxu0 %v400_v42 }
 0x110   :  { %v125_v6 = vpop.f32.mrb[0].mxu0 }
 0x111   :  { %v126_v7 = vadd.f32 %v344_v5, %v125_v6  ;;  %v369_v8 = vpop.f32.mrb[1].mxu0 }
 0x112   :  { %v128_v9 = vpop.f32.mrb[2].mxu0 }
 0x113   :  { %v129_v10 = vadd.f32 %v344_v5, %v128_v9  ;;  %v370_v11 = vpop.f32.mrb[3].mxu0  ;;  %v132_v12 = vmax.f32 %v126_v7, 0.0 }
 0x115   :  { %v133_v13 = vmax.f32 %v129_v10, 0.0 }
 0x117   :  { %v134_v14 = vpack.c.bf16 %v133_v13, %v132_v12 }
 0x119   :  { %376 = vmatmul.mubr.msk.bf16.vlgmr.msra.gmra.mrb[0].mxu1 %vm158_vm2, %v134_v14 }
 0x1ec   :  { %v196_v16 = vpop.f32.mrb[0].mxu1 }
 0x1ed   :  { %v197_v17 = vadd.f32 %v348_v15, %v196_v16  ;;  %v377_v18 = vpop.f32.mrb[1].mxu1 }
 0x1ee   :  { %v199_v19 = vpop.f32.mrb[2].mxu1 }
 0x1ef   :  { %v203_v20 = vsub.f32 0.0, %v197_v17  ;;  %v200_v21 = vadd.f32 %v348_v15, %v199_v19  ;;  %v378_v22 = vpop.f32.mrb[3].mxu1 }
 0x1f1   :  { %v205_v23 = vmul.f32 1.442695, %v203_v20  ;;  %v204_v24 = vsub.f32 0.0, %v200_v21 }
 0x1f3   :  { %401 = vpow2.f32 %v205_v23  ;;  %v207_v25 = vmul.f32 1.442695, %v204_v24 }
 0x1f5   :  { %403 = vpow2.f32 %v207_v25 }
 0x1fd   :  { %v402_v26 = vpop.eup %401 }
 0x1fe   :  { %v209_v27 = vadd.f32 1.0, %v402_v26 }
 0x1ff   :  { %v404_v28 = vpop.eup %403 }
 0x200   :  { %405 = vrcp.f32 %v209_v27  ;;  %v210_v29 = vadd.f32 1.0, %v404_v28 }
 0x202   :  { %407 = vrcp.f32 %v210_v29 }
 0x20a   :  { %v406_v31 = vpop.eup %405 }
 0x20b   :  { %v220_v32 = vmul.f32 %v406_v31, %v352_v30  ;;  %v234_v43 = vsub.f32 1.0, %v406_v31 }
 0x20c   :  { %v408_v33 = vpop.eup %407 }
 0x20d   :  { %224 = vrot.lane.b32.xlu0 %v220_v32, %s488_s26  ;;  %v221_v34 = vmul.f32 %v408_v33, %v352_v30  ;;  %v235_v46 = vsub.f32 1.0, %v408_v33 }
 0x211   :  { %226 = vrot.lane.b32.xlu0 %v221_v34, %s488_s26 }
 0x27f   :  { %v225_v35 = vpop.permute.xlu0 %224 }
 0x280   :  { %v230_v36 = vadd.f32 %v225_v35, %v197_v17 }
 0x282   :  { %409 = vtanh.f32 %v230_v36 }
 0x283   :  { %v227_v37 = vpop.permute.xlu0 %226 }
 0x284   :  { %v231_v38 = vadd.f32 %v227_v37, %v200_v21 }
 0x286   :  { %411 = vtanh.f32 %v231_v38 }
 0x28c   :  { %v410_v39 = vpop.eup %409 }
 0x28d   :  { %238 = vrot.lane.b32.xlu1 %v410_v39, %s489_s4 }
 0x290   :  { %v412_v41 = vpop.eup %411 }
 0x291   :  { %240 = vrot.lane.b32.xlu1 %v412_v41, %s489_s4 }
 0x2ff   :  { %v239_v44 = vpop.permute.xlu1 %238 }
 0x300   :  { %v244_v45 = vmul.f32 %v239_v44, %v234_v43 }
 0x302   :  { %319 = vrot.lane.b32.xlu1 %v244_v45, %s489_s4 }
 0x303   :  { %v241_v47 = vpop.permute.xlu1 %240 }
 0x304   :  { %v245_v48 = vmul.f32 %v241_v47, %v235_v46 }
 0x306   :  { %v246_v49 = vpack.c.bf16 %v245_v48, %v244_v45 }
 0x308   :  { %259 = vrot.lane.b32.xlu0 %v246_v49, %s489_s4 }
 0x30c   :  { %321 = vrot.lane.b32.xlu0 %v245_v48, %s489_s4 }
 0x374   :  { %v320_v50 = vpop.permute.xlu1 %319 }
 0x375   :  { %325 = vst.msk [vmem:[%s625_s8] sm:$0xff] %vm158_vm2, %v320_v50 }
 0x37a   :  { %v260_v51 = vpop.permute.xlu0 %259 }
 0x37b   :  { %384 = vmatmul.mubr.msk.bf16.vlgmr.msra.gmra.mrb[4].mxu0 %vm158_vm2, %v260_v51 }
 0x37e   :  { %v322_v52 = vpop.permute.xlu0 %321 }
 0x37f   :  { %326 = vst.msk [vmem:[%s625_s8 + $0x8] sm:$0xff] %vm158_vm2, %v322_v52 }
 0x44e   :  { %v310_v54 = vpop.f32.mrb[4].mxu0 }
 0x44f   :  { %v311_v55 = vadd.f32 %v353_v53, %v310_v54  ;;  %v385_v56 = vpop.f32.mrb[5].mxu0 }
 0x450   :  { %v313_v57 = vpop.f32.mrb[6].mxu0 }
 0x451   :  { %v314_v58 = vadd.f32 %v353_v53, %v313_v57  ;;  %329 = vrot.lane.b32.xlu1 %v311_v55, %s490_s12  ;;  %v386_v59 = vpop.f32.mrb[7].mxu0 }
 0x453   :  { %331 = vrot.lane.b32.xlu0 %v314_v58, %s490_s12 }
 0x4c3   :  { %v330_v60 = vpop.permute.xlu1 %329 }
 0x4c4   :  { %336 = vst.msk [vmem:[%s625_s8] sm:$0xff] %vm335_vm3, %v330_v60 }
 0x4c5   :  { %v332_v61 = vpop.permute.xlu0 %331 }
 0x4c6   :  { %337 = vst.msk [vmem:[%s625_s8 + $0x8] sm:$0xff] %vm335_vm3, %v332_v61 }
 0x4c7   :  { %342 = vsyncpa [#allocation3], 1 }
 0x4c8   :  { %343 = vsyncpa [#allocation5], 1 }

</bundles_post_ra>
